<compile_context>
chip_gen: v7x
topology: tpu7x:2x2x1
jax: 0.10.0
libtpu: 0.0.40
codegen_flags: <defaults>
</compile_context>

<pallas_src>
import jax
import jax.numpy as jnp
import numpy as np
from jax import lax
from jax.experimental import pallas as pl
from jax.experimental.pallas import tpu as pltpu

_HIDDEN = 256
_OUT_ROWS = 8  # sublane-padded logit rows; every row holds the same logits, wrapper reads row 0


def _round_up(x, m):
    return ((x + m - 1) // m) * m


def _disc_kernel(x_ref, w1_ref, b1_ref, w2_ref, b2_ref, w3_ref, b3_ref, o_ref):
    # Layer 1: (TB, D) @ (D, 256) -> (TB, 256); bf16 operands (weights pre-cast
    # in the wrapper), f32 accumulation; bias add / ReLU in f32.
    x = x_ref[...].astype(jnp.bfloat16)
    h1 = jnp.dot(x, w1_ref[...], preferred_element_type=jnp.float32)
    h1 = jnp.maximum(h1 + b1_ref[...], 0.0)

    # Layer 2: (TB, 256) @ (256, 256) -> (TB, 256)
    h2 = jnp.dot(h1.astype(jnp.bfloat16), w2_ref[...],
                 preferred_element_type=jnp.float32)
    h2 = jnp.maximum(h2 + b2_ref[...], 0.0)

    # Layer 3, lane-major: w3 is an (8, 256) bf16 slab (w3^T replicated over 8
    # sublanes).  Contract both operands over their last dim so the TB batch
    # elements land on the lane axis of the output:  (8,256) . (TB,256)^T -> (8,TB).
    logit = lax.dot_general(
        w3_ref[...], h2.astype(jnp.bfloat16),
        dimension_numbers=(((1,), (1,)), ((), ())),
        preferred_element_type=jnp.float32) + b3_ref[...]

    # Exact sigmoid (exp runs on the otherwise-idle EUP; exact divide keeps
    # log(D)/log(1-D) GAIL rewards accurate near saturation).
    o_ref[...] = 1.0 / (1.0 + jnp.exp(-logit))


def discriminator_forward(x, params, *, block_b=2048):
    """x: (B, D1, D2) float32. Returns (B, 1) float32."""
    b = x.shape[0]
    d = x.shape[1] * x.shape[2]
    x2d = x.reshape(b, d)  # glue reshape (plain JAX)

    w1, b1, w2, b2, w3, b3 = params  # w: (in, out) f32, b: (1, out) f32

    # Pre-cast matmul weights to bf16 once (removes per-tile VPU casts, halves
    # resident-weight VMEM and the one-time weight DMA).  Biases stay f32.
    w1b = w1.astype(jnp.bfloat16)
    w2b = w2.astype(jnp.bfloat16)
    # Layer-3 weight laid out lane-major: (8, 256) = w3^T replicated over 8 sublanes.
    w3r = jnp.broadcast_to(w3.reshape(1, _HIDDEN),
                           (_OUT_ROWS, _HIDDEN)).astype(jnp.bfloat16)
    b3s = b3.reshape(1, 1)

    # --- generation-aware VMEM budget ----------------------------------------
    try:
        vmem_cap = int(getattr(pltpu.get_tpu_info(), "vmem_capacity_bytes",
                               64 * 1024 * 1024))
    except Exception:
        vmem_cap = 64 * 1024 * 1024  # conservative fallback: v7x per-core VMEM
    budget = min(int(vmem_cap * 0.78), 100 * 1024 * 1024)

    weight_bytes = ((w1b.size + w2b.size + w3r.size) * 2
                    + (b1.size + b2.size + b3s.size) * 4)

    def vmem_estimate(tb_):
        # x/out tiles are double-buffered by the pipeline; resident weights are
        # DMA'd once but Pallas still allocates two buffers per input spec, so
        # count them twice.  Plus headroom for compiler scratch.
        return (2 * tb_ * d * 4 + 2 * _OUT_ROWS * tb_ * 4
                + 2 * weight_bytes + 4 * 1024 * 1024)

    # --- batch tile size ------------------------------------------------------
    # Large lane-dense tile (multiple of 128) to amortize grid overhead, but keep
    # >=2 grid steps when the batch allows so the megacore split has work.
    tb = min(block_b, _round_up(b, 128))
    if b > 128:
        tb = min(tb, _round_up((b + 1) // 2, 128))
    tb = max(128, _round_up(tb, 128))
    while tb > 128 and vmem_estimate(tb) > budget:
        tb = max(128, _round_up(tb // 2, 128))
    # TODO(synk): for very large D (image observations) add a second "arbitrary"
    # grid axis over K with an f32 h1 accumulator instead of letting the x tile
    # dominate VMEM and collapse TB.

    b_pad = _round_up(b, tb)
    if b_pad != b:
        x2d = jnp.pad(x2d, ((0, b_pad - b), (0, 0)))
    grid = (b_pad // tb,)

    vmem_bytes = int(min(max(vmem_estimate(tb), 16 * 1024 * 1024), budget))

    resident = lambda arr: pl.BlockSpec(arr.shape, lambda i: (0,) * arr.ndim)

    flops = (2 * b_pad * (d * _HIDDEN + _HIDDEN * _HIDDEN)
             + 2 * _OUT_ROWS * b_pad * _HIDDEN)
    bytes_accessed = (b_pad * d * 4 + _OUT_ROWS * b_pad * 4 + weight_bytes)

    out_rows = pl.pallas_call(
        _disc_kernel,
        out_shape=jax.ShapeDtypeStruct((_OUT_ROWS, b_pad), jnp.float32),
        grid=grid,
        in_specs=[
            pl.BlockSpec((tb, d), lambda i: (i, 0)),      # x tiles, pipelined
            resident(w1b), resident(b1),                  # weights: DMA'd once,
            resident(w2b), resident(b2),                  # held in VMEM across tiles
            resident(w3r), resident(b3s),
        ],
        out_specs=pl.BlockSpec((_OUT_ROWS, tb), lambda i: (0, i)),  # lane-major logits
        compiler_params=pltpu.CompilerParams(
            dimension_semantics=("parallel",),            # megacore batch split (v7x)
            vmem_limit_bytes=vmem_bytes,
        ),
        cost_estimate=pl.CostEstimate(
            flops=int(flops),
            transcendentals=int(_OUT_ROWS * b_pad),
            bytes_accessed=int(bytes_accessed),
        ),
    )(x2d, w1b, b1, w2b, b2, w3r, b3s)

    # Row 0 holds the real logits; drop batch padding and restore (B, 1).
    return out_rows[0, :b].reshape(b, 1)


def init_params(input_dim, key):
    """PyTorch-Linear-style init (uniform +/- 1/sqrt(fan_in)).

    Weights are stored as (in, out) = W_pytorch.T so the kernel does x @ W.
    Biases are (1, out) rows.
    """
    ks = jax.random.split(key, 6)

    def lin(kw, kb, fan_in, fan_out):
        bound = 1.0 / np.sqrt(fan_in)
        w = jax.random.uniform(kw, (fan_in, fan_out), jnp.float32, -bound, bound)
        bias = jax.random.uniform(kb, (1, fan_out), jnp.float32, -bound, bound)
        return w, bias

    w1, b1 = lin(ks[0], ks[1], input_dim, _HIDDEN)
    w2, b2 = lin(ks[2], ks[3], _HIDDEN, _HIDDEN)
    w3, b3 = lin(ks[4], ks[5], _HIDDEN, 1)
    return (w1, b1, w2, b2, w3, b3)


def _reference_forward(x, params):
    w1, b1, w2, b2, w3, b3 = params
    x2d = x.reshape(x.shape[0], -1)
    h1 = jnp.maximum(x2d @ w1 + b1, 0.0)
    h2 = jnp.maximum(h1 @ w2 + b2, 0.0)
    return jax.nn.sigmoid(h2 @ w3 + b3)


if __name__ == "__main__":
    key = jax.random.PRNGKey(0)
    k_x, k_x2, k_p = jax.random.split(key, 3)

    # Small shapes consistent with forward(): (B, D1, D2), input_dim = D1 * D2.
    B, D1, D2 = 8, 4, 8
    input_dim = D1 * D2
    params = init_params(input_dim, k_p)

    # Test 1: tiny batch (single tile).
    x = jax.random.normal(k_x, (B, D1, D2), dtype=jnp.float32)
    out = jax.block_until_ready(discriminator_forward(x, params))
    ref = _reference_forward(x, params)
    assert out.shape == (B, 1)
    # bf16 matmul operands -> loosen tolerance vs the f32 reference.
    np.testing.assert_allclose(np.asarray(out), np.asarray(ref), rtol=2e-2, atol=2e-2)

    # Test 2: batch that is not a multiple of the tile (exercises padding + multi-tile grid).
    B2 = 300
    x2 = jax.random.normal(k_x2, (B2, D1, D2), dtype=jnp.float32)
    out2 = jax.block_until_ready(discriminator_forward(x2, params))
    ref2 = _reference_forward(x2, params)
    assert out2.shape == (B2, 1)
    np.testing.assert_allclose(np.asarray(out2), np.asarray(ref2), rtol=2e-2, atol=2e-2)

    print("KERNEL_OK")
</pallas_src>

<mosaic_0001>
module attributes {stable_mosaic.version = 11 : i64} {
  func.func @_disc_kernel(%arg0: i32, %arg1: memref<128x32xf32, #tpu.memory_space<vmem>>, %arg2: memref<32x256xbf16, #tpu.memory_space<vmem>>, %arg3: memref<1x256xf32, #tpu.memory_space<vmem>>, %arg4: memref<256x256xbf16, #tpu.memory_space<vmem>>, %arg5: memref<1x256xf32, #tpu.memory_space<vmem>>, %arg6: memref<8x256xbf16, #tpu.memory_space<vmem>>, %arg7: memref<1x1xf32, #tpu.memory_space<vmem>>, %arg8: memref<8x128xf32, #tpu.memory_space<vmem>>) attributes {dimension_semantics = [#tpu.dimension_semantics<parallel>], iteration_bounds = array<i64: 1>, scalar_prefetch = 0 : i64, scratch_operands = 0 : i64, tpu.core_type = #tpu.core_type<tc>, window_params = [{transform_indices = @transform_0, window_bounds = array<i64: 128, 32>}, {pipeline_mode = #tpu.pipeline_mode<synchronous>, transform_indices = @transform_1, window_bounds = array<i64: 32, 256>}, {pipeline_mode = #tpu.pipeline_mode<synchronous>, transform_indices = @transform_2, window_bounds = array<i64: 1, 256>}, {pipeline_mode = #tpu.pipeline_mode<synchronous>, transform_indices = @transform_3, window_bounds = array<i64: 256, 256>}, {pipeline_mode = #tpu.pipeline_mode<synchronous>, transform_indices = @transform_4, window_bounds = array<i64: 1, 256>}, {pipeline_mode = #tpu.pipeline_mode<synchronous>, transform_indices = @transform_5, window_bounds = array<i64: 8, 256>}, {pipeline_mode = #tpu.pipeline_mode<synchronous>, transform_indices = @transform_6, window_bounds = array<i64: 1, 1>}, {transform_indices = @transform_7, window_bounds = array<i64: 8, 128>}]} {
    %c0 = arith.constant 0 : index
    %c0_0 = arith.constant 0 : index
    %0 = vector.load %arg1[%c0, %c0_0] : memref<128x32xf32, #tpu.memory_space<vmem>>, vector<128x32xf32>
    %1 = arith.truncf %0 : vector<128x32xf32> to vector<128x32xbf16>
    %c0_1 = arith.constant 0 : index
    %c0_2 = arith.constant 0 : index
    %2 = vector.load %arg2[%c0_1, %c0_2] : memref<32x256xbf16, #tpu.memory_space<vmem>>, vector<32x256xbf16>
    %cst = arith.constant dense<0.000000e+00> : vector<128x256xf32>
    %3 = tpu.matmul %1, %2, %cst {dimension_numbers = #tpu.dot_dimension_numbers<[1], [0], [0], [1], [0, 0, 1, 1], [], []>} : vector<128x32xbf16>, vector<32x256xbf16>, vector<128x256xf32> -> vector<128x256xf32>
    %c0_3 = arith.constant 0 : index
    %c0_4 = arith.constant 0 : index
    %4 = vector.load %arg3[%c0_3, %c0_4] : memref<1x256xf32, #tpu.memory_space<vmem>>, vector<1x256xf32>
    %5 = vector.broadcast %4 : vector<1x256xf32> to vector<128x256xf32>
    %6 = arith.addf %3, %5 : vector<128x256xf32>
    %cst_5 = arith.constant 0.000000e+00 : f32
    %7 = vector.broadcast %cst_5 : f32 to vector<128x256xf32>
    %8 = arith.maximumf %6, %7 : vector<128x256xf32>
    %9 = arith.truncf %8 : vector<128x256xf32> to vector<128x256xbf16>
    %c0_6 = arith.constant 0 : index
    %c0_7 = arith.constant 0 : index
    %10 = vector.load %arg4[%c0_6, %c0_7] : memref<256x256xbf16, #tpu.memory_space<vmem>>, vector<256x256xbf16>
    %cst_8 = arith.constant dense<0.000000e+00> : vector<128x256xf32>
    %11 = tpu.matmul %9, %10, %cst_8 {dimension_numbers = #tpu.dot_dimension_numbers<[1], [0], [0], [1], [0, 0, 1, 1], [], []>} : vector<128x256xbf16>, vector<256x256xbf16>, vector<128x256xf32> -> vector<128x256xf32>
    %c0_9 = arith.constant 0 : index
    %c0_10 = arith.constant 0 : index
    %12 = vector.load %arg5[%c0_9, %c0_10] : memref<1x256xf32, #tpu.memory_space<vmem>>, vector<1x256xf32>
    %13 = vector.broadcast %12 : vector<1x256xf32> to vector<128x256xf32>
    %14 = arith.addf %11, %13 : vector<128x256xf32>
    %cst_11 = arith.constant 0.000000e+00 : f32
    %15 = vector.broadcast %cst_11 : f32 to vector<128x256xf32>
    %16 = arith.maximumf %14, %15 : vector<128x256xf32>
    %c0_12 = arith.constant 0 : index
    %c0_13 = arith.constant 0 : index
    %17 = vector.load %arg6[%c0_12, %c0_13] : memref<8x256xbf16, #tpu.memory_space<vmem>>, vector<8x256xbf16>
    %18 = arith.truncf %16 : vector<128x256xf32> to vector<128x256xbf16>
    %cst_14 = arith.constant dense<0.000000e+00> : vector<8x128xf32>
    %19 = tpu.matmul %17, %18, %cst_14 {dimension_numbers = #tpu.dot_dimension_numbers<[1], [1], [0], [0], [0, 0, 1, 0], [], []>} : vector<8x256xbf16>, vector<128x256xbf16>, vector<8x128xf32> -> vector<8x128xf32>
    %c0_15 = arith.constant 0 : index
    %c0_16 = arith.constant 0 : index
    %20 = vector.load %arg7[%c0_15, %c0_16] : memref<1x1xf32, #tpu.memory_space<vmem>>, vector<1x1xf32>
    %21 = vector.broadcast %20 : vector<1x1xf32> to vector<8x128xf32>
    %22 = arith.addf %19, %21 : vector<8x128xf32>
    %cst_17 = arith.constant 0.000000e+00 : f32
    %23 = vector.broadcast %cst_17 : f32 to vector<8x128xf32>
    %24 = arith.subf %23, %22 : vector<8x128xf32>
    %25 = math.exp %24 : vector<8x128xf32>
    %cst_18 = arith.constant 1.000000e+00 : f32
    %26 = vector.broadcast %cst_18 : f32 to vector<8x128xf32>
    %27 = arith.addf %26, %25 : vector<8x128xf32>
    %cst_19 = arith.constant 1.000000e+00 : f32
    %28 = vector.broadcast %cst_19 : f32 to vector<8x128xf32>
    %29 = arith.divf %28, %27 : vector<8x128xf32>
    %c0_20 = arith.constant 0 : index
    %c0_21 = arith.constant 0 : index
    %30 = vector.load %arg8[%c0_20, %c0_21] : memref<8x128xf32, #tpu.memory_space<vmem>>, vector<8x128xf32>
    tpu.vector_store %arg8[%c0_20, %c0_21], %29 {strides = array<i32>} : memref<8x128xf32, #tpu.memory_space<vmem>>, vector<8x128xf32>,
    return
  }
  func.func @transform_0(%arg0: i32) -> (i32, i32) {
    %c0_i32 = arith.constant 0 : i32
    %c0_i32_0 = arith.constant 0 : i32
    return %arg0, %c0_i32 : i32, i32
  }
  func.func @transform_1(%arg0: i32) -> (i32, i32) {
    %c0_i32 = arith.constant 0 : i32
    %c0_i32_0 = arith.constant 0 : i32
    %c0_i32_1 = arith.constant 0 : i32
    return %c0_i32, %c0_i32_0 : i32, i32
  }
  func.func @transform_2(%arg0: i32) -> (i32, i32) {
    %c0_i32 = arith.constant 0 : i32
    %c0_i32_0 = arith.constant 0 : i32
    %c0_i32_1 = arith.constant 0 : i32
    return %c0_i32, %c0_i32_0 : i32, i32
  }
  func.func @transform_3(%arg0: i32) -> (i32, i32) {
    %c0_i32 = arith.constant 0 : i32
    %c0_i32_0 = arith.constant 0 : i32
    %c0_i32_1 = arith.constant 0 : i32
    return %c0_i32, %c0_i32_0 : i32, i32
  }
  func.func @transform_4(%arg0: i32) -> (i32, i32) {
    %c0_i32 = arith.constant 0 : i32
    %c0_i32_0 = arith.constant 0 : i32
    %c0_i32_1 = arith.constant 0 : i32
    return %c0_i32, %c0_i32_0 : i32, i32
  }
  func.func @transform_5(%arg0: i32) -> (i32, i32) {
    %c0_i32 = arith.constant 0 : i32
    %c0_i32_0 = arith.constant 0 : i32
    %c0_i32_1 = arith.constant 0 : i32
    return %c0_i32, %c0_i32_0 : i32, i32
  }
  func.func @transform_6(%arg0: i32) -> (i32, i32) {
    %c0_i32 = arith.constant 0 : i32
    %c0_i32_0 = arith.constant 0 : i32
    %c0_i32_1 = arith.constant 0 : i32
    return %c0_i32, %c0_i32_0 : i32, i32
  }
  func.func @transform_7(%arg0: i32) -> (i32, i32) {
    %c0_i32 = arith.constant 0 : i32
    %c0_i32_0 = arith.constant 0 : i32
    return %c0_i32, %arg0 : i32, i32
  }
}

</mosaic_0001>

<bundles_post_ra>
// kernel: tpu_custom_call.1
= control target key start
LH: loop header
LB: loop body
LE: loop exit
PB: predicated region body
PF: predicated region fallthrough
CT: control target
= control target key end

     0   :  { %s1144_s0 = inlined_call_operand.vmem [shape: f32[128,32], index: 0, kind: input, shape index: {}]   ;;  %s1145_s1 = inlined_call_operand.vmem [shape: bf16[32,256], index: 1, kind: input, shape index: {}]   ;;  %s1146_s2 = inlined_call_operand.vmem [shape: f32[1,256], index: 2, kind: input, shape index: {}]   ;;  %s1147_s3 = inlined_call_operand.hbm [shape: bf16[256,256], index: 3, kind: input, shape index: {}]   ;;  %s1148_s4 = inlined_call_operand.vmem [shape: f32[1,256], index: 4, kind: input, shape index: {}]   ;;  %s1149_s5 = inlined_call_operand.vmem [shape: bf16[8,256], index: 5, kind: input, shape index: {}]   ;;  %s1150_s6 = inlined_call_operand.<no memory space> [shape: f32[1,1], index: 6, kind: input, shape index: {}]   ;;  %s1151_s7 = inlined_call_operand.hbm [shape: f32[8,128], index: 7, kind: output, shape index: {}]  }
   0x1   :  { %v12_v0 = vstv %s1150_s6 }
   0x2   :  { %13 = vst [vmem:[#allocation2] sm:$0x1] %v12_v0 }
   0x3   :  { %14 = vsyncpa [#allocation4], 0 }
   0x4   :  { %15 = vsyncpa [#allocation5], 0  ;;  %s896_s26 = smov [#allocation3]   ;;  %s848_s30 = scalar_lea.hbm %s1147_s3, 4096 }
   0x5   :  { %s27_s27 = sshll.u32 %s896_s26, 4  ;;  %p849_p0 = scmp.ne.s32.totalorder %s1147_s3, %s848_s30  ;;  %s28_s27 = int_to_ptr.vmem [resolvable:$true] %s27_s27 }
   0x6   :  { %p852_p1 = scmp.lt.u32.totalorder %s848_s30, %s1147_s3 }
   0x8   :  { %p854_p2 = pnand %p852_p1, %p849_p0 }
   0xa   :  { %857 = shalt.err (!%p854_p2)
}
   0xb   :  { %s858_s6 = scalar_lea.vmem %s28_s27, 4096  ;;  %p863_p4 = scmp.lt.s32.totalorder %s28_s27, %s28_s27 }
   0xc   :  { %p859_p3 = scmp.ne.s32.totalorder %s28_s27, %s858_s6  ;;  %p864_p5 = scmp.lt.s32.totalorder %s858_s6, %s858_s6 }
   0xe   :  { %p865_p6 = por %p864_p5, %p863_p4 }
  0x10   :  { %p866_p7 = pnand %p865_p6, %p859_p3 }
  0x12   :  { %869 = shalt.err (!%p866_p7)
}
  0x13   :  { %s897_s12 = smov 128   ;;  %s898_s13 = smov 8  }
  0x14   :  { %33 = dma.hbm_to_vmem [thread:$0]  %s1147_s3, 4096, %s28_s27, [#allocation4], %s897_s12, %s897_s12, %s898_s13  }
  0x15   :  { %892 = dma.done.wait [#allocation4], 4096  }
  0x16   :  { %893 = vsyncadd [#allocation4], 4294963200  ;;  %v899_v1 = vmov 0   ;;  %v788_v2 = vld [vmem:[%s1145_s1 + $0x4] ss:$8 sps:$4 sm:$0xff]   ;;  %vm104_vm0 = vcmask 261120   ;;  %v74_v62 = vlaneseq }
  0x17   :  { %161 = vmatprep.mubr.bf16.mxu0 %v899_v1  ;;  %787 = vset.pattern.permute.xlu0 %v899_v1  ;;  %v790_v3 = vld [vmem:[%s1145_s1] ss:$8 sps:$4 sm:$0xff]   ;;  %v791_v4 = vld [vmem:[%s1145_s1 + $0x14] ss:$8 sps:$4 sm:$0xff]   ;;  %v793_v5 = vld [vmem:[%s1145_s1 + $0x10] ss:$8 sps:$4 sm:$0xff]  }
  0x18   :  { %129 = vmatprep.subr.bf16.mxu0 %v788_v2  ;;  %v44_v6 = vld [vmem:[%s1144_s0] sm:$0xff]  ;;  %v45_v7 = vld [vmem:[%s1144_s0 + $0x8] sm:$0xff]  ;;  %v46_v11 = vld [vmem:[%s1144_s0 + $0x10] sm:$0xff]  ;;  %v1033_v63 = vshrl.u32 %v74_v62, 7 }
  0x19   :  { %130 = vmatpush1.bf16.msra.mxu0 %v790_v3  ;;  %v60_v8 = vpack.c.bf16 %v45_v7, %v44_v6  ;;  %v794_v9 = vld [vmem:[#allocation3 + $0x4] ss:$8 sps:$4 sm:$0xff]   ;;  %v796_v10 = vld [vmem:[#allocation3] ss:$8 sps:$4 sm:$0xff]   ;;  %v797_v12 = vld [vmem:[#allocation3 + $0x14] ss:$8 sps:$4 sm:$0xff]  }
  0x1a   :  { %131 = vmatprep.subr.bf16.mxu0 %v791_v4  ;;  %494 = vmatprep.subr.bf16.mxu1 %v794_v9  ;;  %v47_v13 = vld [vmem:[%s1144_s0 + $0x18] sm:$0xff]  ;;  %v800_v15 = vld [vmem:[#allocation3 + $0x24] ss:$8 sps:$4 sm:$0xff]   ;;  %v802_v17 = vld [vmem:[#allocation3 + $0x20] ss:$8 sps:$4 sm:$0xff]   ;;  %v76_v0 = vsub.s32 0, %v1033_v63 }
  0x1b   :  { %495 = vmatpush1.bf16.msra.mxu1 %v796_v10  ;;  %v799_v14 = vld [vmem:[#allocation3 + $0x10] ss:$8 sps:$4 sm:$0xff]   ;;  %v61_v16 = vpack.c.bf16 %v47_v13, %v46_v11  ;;  %v803_v18 = vld [vmem:[#allocation3 + $0x34] ss:$8 sps:$4 sm:$0xff]   ;;  %v49_v20 = vld [vmem:[%s1144_s0 + $0x28] sm:$0xff]  ;;  %v80_v2 = vsub.s32 1, %v1033_v63 }
  0x1c   :  { %496 = vmatprep.subr.bf16.mxu1 %v797_v12  ;;  %v48_v19 = vld [vmem:[%s1144_s0 + $0x20] sm:$0xff]  ;;  %v805_v21 = vld [vmem:[#allocation3 + $0x30] ss:$8 sps:$4 sm:$0xff]   ;;  %v53_v34 = vld [vmem:[%s1144_s0 + $0x48] sm:$0xff] }
  0x1d   :  { %132 = vmatpush1.bf16.msra.mxu0 %v793_v5  ;;  %v806_v22 = vld [vmem:[#allocation3 + $0x44] ss:$8 sps:$4 sm:$0xff]   ;;  %v62_v23 = vpack.c.bf16 %v49_v20, %v48_v19  ;;  %v808_v24 = vld [vmem:[#allocation3 + $0x40] ss:$8 sps:$4 sm:$0xff]   ;;  %v809_v25 = vld [vmem:[#allocation3 + $0x54] ss:$8 sps:$4 sm:$0xff]  }
  0x1e   :  { %v50_v26 = vld [vmem:[%s1144_s0 + $0x30] sm:$0xff]  ;;  %v51_v27 = vld [vmem:[%s1144_s0 + $0x38] sm:$0xff]  ;;  %v814_v31 = vld [vmem:[#allocation3 + $0x60] ss:$8 sps:$4 sm:$0xff]  }
  0x1f   :  { %497 = vmatpush1.bf16.msra.mxu1 %v799_v14  ;;  %v811_v28 = vld [vmem:[#allocation3 + $0x50] ss:$8 sps:$4 sm:$0xff]   ;;  %v812_v29 = vld [vmem:[#allocation3 + $0x64] ss:$8 sps:$4 sm:$0xff]   ;;  %v63_v30 = vpack.c.bf16 %v51_v27, %v50_v26  ;;  %v815_v32 = vld [vmem:[#allocation3 + $0x74] ss:$8 sps:$4 sm:$0xff]  }
  0x20   :  { %739 = vmatmul.mubr.msk.bf16.vlgmr.msra.gmra.mrb[0].mxu0 %vm104_vm0, %v60_v8  ;;  %498 = vmatprep.subr.bf16.mxu1 %v800_v15  ;;  %v52_v33 = vld [vmem:[%s1144_s0 + $0x40] sm:$0xff]  ;;  %v817_v35 = vld [vmem:[#allocation3 + $0x70] ss:$8 sps:$4 sm:$0xff]   ;;  %v57_v48 = vld [vmem:[%s1144_s0 + $0x68] sm:$0xff] }
  0x21   :  { %171 = vmatprep.mubr.bf16.mxu0 %v899_v1  ;;  %v818_v36 = vld [vmem:[#allocation3 + $0x84] ss:$8 sps:$4 sm:$0xff]   ;;  %v64_v37 = vpack.c.bf16 %v53_v34, %v52_v33  ;;  %v820_v38 = vld [vmem:[#allocation3 + $0x80] ss:$8 sps:$4 sm:$0xff]   ;;  %v821_v39 = vld [vmem:[#allocation3 + $0x94] ss:$8 sps:$4 sm:$0xff]  }
  0x22   :  { %v54_v40 = vld [vmem:[%s1144_s0 + $0x50] sm:$0xff]  ;;  %v55_v41 = vld [vmem:[%s1144_s0 + $0x58] sm:$0xff]  ;;  %v826_v45 = vld [vmem:[#allocation3 + $0xa0] ss:$8 sps:$4 sm:$0xff]  }
  0x23   :  { %499 = vmatpush1.bf16.msra.mxu1 %v802_v17  ;;  %v823_v42 = vld [vmem:[#allocation3 + $0x90] ss:$8 sps:$4 sm:$0xff]   ;;  %v824_v43 = vld [vmem:[#allocation3 + $0xa4] ss:$8 sps:$4 sm:$0xff]   ;;  %v65_v44 = vpack.c.bf16 %v55_v41, %v54_v40  ;;  %v827_v46 = vld [vmem:[#allocation3 + $0xb4] ss:$8 sps:$4 sm:$0xff]  }
  0x24   :  { %500 = vmatprep.subr.bf16.mxu1 %v803_v18  ;;  %v56_v47 = vld [vmem:[%s1144_s0 + $0x60] sm:$0xff]  ;;  %v829_v49 = vld [vmem:[#allocation3 + $0xb0] ss:$8 sps:$4 sm:$0xff]  }
  0x25   :  { %v830_v50 = vld [vmem:[#allocation3 + $0xc4] ss:$8 sps:$4 sm:$0xff]   ;;  %v66_v51 = vpack.c.bf16 %v57_v48, %v56_v47  ;;  %v832_v52 = vld [vmem:[#allocation3 + $0xc0] ss:$8 sps:$4 sm:$0xff]   ;;  %v833_v53 = vld [vmem:[#allocation3 + $0xd4] ss:$8 sps:$4 sm:$0xff]  }
  0x26   :  { %v58_v54 = vld [vmem:[%s1144_s0 + $0x70] sm:$0xff]  ;;  %v59_v55 = vld [vmem:[%s1144_s0 + $0x78] sm:$0xff]  ;;  %v838_v59 = vld [vmem:[#allocation3 + $0xe0] ss:$8 sps:$4 sm:$0xff]  }
  0x27   :  { %501 = vmatpush1.bf16.msra.mxu1 %v805_v21  ;;  %v67_v56 = vpack.c.bf16 %v59_v55, %v58_v54  ;;  %v835_v57 = vld [vmem:[#allocation3 + $0xd0] ss:$8 sps:$4 sm:$0xff]   ;;  %v836_v58 = vld [vmem:[#allocation3 + $0xe4] ss:$8 sps:$4 sm:$0xff]   ;;  %v839_v60 = vld [vmem:[#allocation3 + $0xf4] ss:$8 sps:$4 sm:$0xff]  }
  0x28   :  { %740 = vmatmul.mubr.msk.bf16.gmra.mrb[4].mxu0 %vm104_vm0, %v61_v16  ;;  %502 = vmatprep.subr.bf16.mxu1 %v806_v22  ;;  %v841_v61 = vld [vmem:[#allocation3 + $0xf0] ss:$8 sps:$4 sm:$0xff]  }
  0x29   :  { %181 = vmatprep.mubr.bf16.mxu0 %v899_v1 }
  0x2b   :  { %503 = vmatpush1.bf16.msra.mxu1 %v808_v24 }
  0x2c   :  { %504 = vmatprep.subr.bf16.mxu1 %v809_v25 }
  0x2f   :  { %505 = vmatpush1.bf16.msra.mxu1 %v811_v28 }
  0x30   :  { %741 = vmatmul.mubr.msk.bf16.gmra.mrb[8].mxu0 %vm104_vm0, %v62_v23  ;;  %506 = vmatprep.subr.bf16.mxu1 %v812_v29 }
  0x31   :  { %191 = vmatprep.mubr.bf16.mxu0 %v899_v1 }
  0x33   :  { %507 = vmatpush1.bf16.msra.mxu1 %v814_v31 }
  0x34   :  { %508 = vmatprep.subr.bf16.mxu1 %v815_v32 }
  0x37   :  { %509 = vmatpush1.bf16.msra.mxu1 %v817_v35 }
  0x38   :  { %742 = vmatmul.mubr.msk.bf16.gmra.mrb[12].mxu0 %vm104_vm0, %v63_v30  ;;  %510 = vmatprep.subr.bf16.mxu1 %v818_v36 }
  0x39   :  { %201 = vmatprep.mubr.bf16.mxu0 %v899_v1 }
  0x3b   :  { %511 = vmatpush1.bf16.msra.mxu1 %v820_v38 }
  0x3c   :  { %512 = vmatprep.subr.bf16.mxu1 %v821_v39 }
  0x3f   :  { %513 = vmatpush1.bf16.msra.mxu1 %v823_v42 }
  0x40   :  { %743 = vmatmul.mubr.msk.bf16.gmra.mrb[16].mxu0 %vm104_vm0, %v64_v37  ;;  %514 = vmatprep.subr.bf16.mxu1 %v824_v43 }
  0x41   :  { %211 = vmatprep.mubr.bf16.mxu0 %v899_v1 }
  0x43   :  { %515 = vmatpush1.bf16.msra.mxu1 %v826_v45 }
  0x44   :  { %516 = vmatprep.subr.bf16.mxu1 %v827_v46 }
  0x47   :  { %517 = vmatpush1.bf16.msra.mxu1 %v829_v49 }
  0x48   :  { %744 = vmatmul.mubr.msk.bf16.gmra.mrb[20].mxu0 %vm104_vm0, %v65_v44  ;;  %518 = vmatprep.subr.bf16.mxu1 %v830_v50 }
  0x49   :  { %221 = vmatprep.mubr.bf16.mxu0 %v899_v1 }
  0x4b   :  { %519 = vmatpush1.bf16.msra.mxu1 %v832_v52 }
  0x4c   :  { %520 = vmatprep.subr.bf16.mxu1 %v833_v53 }
  0x4f   :  { %521 = vmatpush1.bf16.msra.mxu1 %v835_v57 }
  0x50   :  { %745 = vmatmul.mubr.msk.bf16.gmra.mrb[24].mxu0 %vm104_vm0, %v66_v51  ;;  %522 = vmatprep.subr.bf16.mxu1 %v836_v58 }
  0x51   :  { %231 = vmatprep.mubr.bf16.mxu0 %v899_v1  ;;  %v72_v1 = vld [vmem:[%s1146_s2] sm:$0x3] }
  0x52   :  { %v1042_v3 = vrot.slane %v72_v1, %v76_v0  ;;  %v1046_v4 = vrot.slane %v72_v1, %v80_v2 }
  0x53   :  { %523 = vmatpush1.bf16.msra.mxu1 %v838_v59 }
  0x54   :  { %524 = vmatprep.subr.bf16.mxu1 %v839_v60 }
  0x57   :  { %525 = vmatpush1.bf16.msra.mxu1 %v841_v61 }
  0x58   :  { %746 = vmatmul.mubr.msk.bf16.gmra.mrb[28].mxu0 %vm104_vm0, %v67_v56 }
  0xf3   :  { %v163_v5 = vpop.f32.mrb[0].mxu0 }
  0xf4   :  { %v164_v6 = vadd.f32 %v163_v5, %v1042_v3  ;;  %v165_v7 = vpop.f32.mrb[1].mxu0 }
  0xf5   :  { %v166_v8 = vadd.f32 %v165_v7, %v1046_v4  ;;  %v167_v9 = vpop.f32.mrb[2].mxu0 }
  0xf6   :  { %v168_v10 = vadd.f32 %v167_v9, %v1042_v3  ;;  %v169_v11 = vpop.f32.mrb[3].mxu0  ;;  %v242_v13 = vmax.f32 %v164_v6, 0.0 }
  0xf7   :  { %v170_v12 = vadd.f32 %v169_v11, %v1046_v4  ;;  %v243_v15 = vmax.f32 %v166_v8, 0.0 }
  0xf8   :  { %v244_v14 = vmax.f32 %v168_v10, 0.0 }
  0xf9   :  { %v245_v16 = vmax.f32 %v170_v12, 0.0 }
  0xfa   :  { %v274_v17 = vpack.c.bf16 %v244_v14, %v242_v13 }
  0xfb   :  { %v173_v18 = vpop.f32.mrb[4].mxu0  ;;  %v275_v19 = vpack.c.bf16 %v245_v16, %v243_v15 }
  0xfc   :  { %v174_v20 = vadd.f32 %v173_v18, %v1042_v3  ;;  %v175_v21 = vpop.f32.mrb[5].mxu0 }
  0xfd   :  { %v176_v22 = vadd.f32 %v175_v21, %v1046_v4  ;;  %v177_v23 = vpop.f32.mrb[6].mxu0  ;;  %526 = vmatprep.mubr.bf16.mxu1 %v275_v19 }
  0xfe   :  { %v178_v24 = vadd.f32 %v177_v23, %v1042_v3  ;;  %v179_v25 = vpop.f32.mrb[7].mxu0  ;;  %527 = vmatmul.mubr.bf16.vlgmr.msra.gmra.mrb[0].mxu1 %v274_v17  ;;  %v246_v27 = vmax.f32 %v174_v20, 0.0 }
  0xff   :  { %v180_v26 = vadd.f32 %v179_v25, %v1046_v4  ;;  %v247_v29 = vmax.f32 %v176_v22, 0.0 }
 0x100   :  { %v248_v28 = vmax.f32 %v178_v24, 0.0 }
 0x101   :  { %v249_v30 = vmax.f32 %v180_v26, 0.0 }
 0x102   :  { %v276_v31 = vpack.c.bf16 %v248_v28, %v246_v27 }
 0x103   :  { %v277_v32 = vpack.c.bf16 %v249_v30, %v247_v29  ;;  %v183_v33 = vpop.f32.mrb[8].mxu0 }
 0x104   :  { %v184_v34 = vadd.f32 %v183_v33, %v1042_v3  ;;  %v185_v35 = vpop.f32.mrb[9].mxu0 }
 0x105   :  { %v186_v36 = vadd.f32 %v185_v35, %v1046_v4  ;;  %v187_v37 = vpop.f32.mrb[10].mxu0  ;;  %536 = vmatprep.mubr.bf16.mxu1 %v277_v32 }
 0x106   :  { %v188_v38 = vadd.f32 %v187_v37, %v1042_v3  ;;  %v189_v39 = vpop.f32.mrb[11].mxu0  ;;  %537 = vmatmul.mubr.bf16.gmra.mrb[4].mxu1 %v276_v31  ;;  %v250_v41 = vmax.f32 %v184_v34, 0.0 }
 0x107   :  { %v190_v40 = vadd.f32 %v189_v39, %v1046_v4  ;;  %v251_v43 = vmax.f32 %v186_v36, 0.0 }
 0x108   :  { %v252_v42 = vmax.f32 %v188_v38, 0.0 }
 0x109   :  { %v253_v44 = vmax.f32 %v190_v40, 0.0 }
 0x10a   :  { %v278_v45 = vpack.c.bf16 %v252_v42, %v250_v41 }
 0x10b   :  { %v279_v46 = vpack.c.bf16 %v253_v44, %v251_v43  ;;  %v193_v47 = vpop.f32.mrb[12].mxu0 }
 0x10c   :  { %v194_v48 = vadd.f32 %v193_v47, %v1042_v3  ;;  %v195_v49 = vpop.f32.mrb[13].mxu0 }
 0x10d   :  { %v196_v50 = vadd.f32 %v195_v49, %v1046_v4  ;;  %v197_v51 = vpop.f32.mrb[14].mxu0  ;;  %546 = vmatprep.mubr.bf16.mxu1 %v279_v46 }
 0x10e   :  { %v198_v52 = vadd.f32 %v197_v51, %v1042_v3  ;;  %v199_v53 = vpop.f32.mrb[15].mxu0  ;;  %547 = vmatmul.mubr.bf16.gmra.mrb[8].mxu1 %v278_v45  ;;  %v254_v55 = vmax.f32 %v194_v48, 0.0 }
 0x10f   :  { %v200_v54 = vadd.f32 %v199_v53, %v1046_v4  ;;  %v255_v57 = vmax.f32 %v196_v50, 0.0 }
 0x110   :  { %v256_v56 = vmax.f32 %v198_v52, 0.0 }
 0x111   :  { %v257_v58 = vmax.f32 %v200_v54, 0.0 }
 0x112   :  { %v280_v59 = vpack.c.bf16 %v256_v56, %v254_v55 }
 0x113   :  { %v281_v60 = vpack.c.bf16 %v257_v58, %v255_v57  ;;  %v203_v61 = vpop.f32.mrb[16].mxu0  ;;  %v1083_v58 = vld [vmem:[%s1149_s5] sm:$0xff] }
 0x114   :  { %v204_v62 = vadd.f32 %v203_v61, %v1042_v3  ;;  %v205_v1 = vpop.f32.mrb[17].mxu0 }
 0x115   :  { %v206_v5 = vadd.f32 %v205_v1, %v1046_v4  ;;  %v207_v6 = vpop.f32.mrb[18].mxu0  ;;  %556 = vmatprep.mubr.bf16.mxu1 %v281_v60 }
 0x116   :  { %v208_v7 = vadd.f32 %v207_v6, %v1042_v3  ;;  %v209_v8 = vpop.f32.mrb[19].mxu0  ;;  %557 = vmatmul.mubr.bf16.gmra.mrb[12].mxu1 %v280_v59  ;;  %v258_v10 = vmax.f32 %v204_v62, 0.0  ;;  %v779_v59 = vld [vmem:[#allocation2] ss:$0 sm:$0xff] }
 0x117   :  { %v210_v9 = vadd.f32 %v209_v8, %v1046_v4  ;;  %v259_v12 = vmax.f32 %v206_v5, 0.0  ;;  %663 = vperm.xlu0 %787, %v779_v59  }
 0x118   :  { %v260_v11 = vmax.f32 %v208_v7, 0.0 }
 0x119   :  { %v261_v13 = vmax.f32 %v210_v9, 0.0 }
 0x11a   :  { %v282_v14 = vpack.c.bf16 %v260_v11, %v258_v10 }
 0x11b   :  { %v283_v15 = vpack.c.bf16 %v261_v13, %v259_v12  ;;  %v213_v16 = vpop.f32.mrb[20].mxu0 }
 0x11c   :  { %v214_v17 = vadd.f32 %v213_v16, %v1042_v3  ;;  %v215_v18 = vpop.f32.mrb[21].mxu0 }
 0x11d   :  { %v216_v19 = vadd.f32 %v215_v18, %v1046_v4  ;;  %v217_v20 = vpop.f32.mrb[22].mxu0  ;;  %566 = vmatprep.mubr.bf16.mxu1 %v283_v15 }
 0x11e   :  { %v218_v21 = vadd.f32 %v217_v20, %v1042_v3  ;;  %v219_v22 = vpop.f32.mrb[23].mxu0  ;;  %567 = vmatmul.mubr.bf16.gmra.mrb[16].mxu1 %v282_v14  ;;  %v262_v24 = vmax.f32 %v214_v17, 0.0 }
 0x11f   :  { %v220_v23 = vadd.f32 %v219_v22, %v1046_v4  ;;  %v263_v26 = vmax.f32 %v216_v19, 0.0 }
 0x120   :  { %v264_v25 = vmax.f32 %v218_v21, 0.0 }
 0x121   :  { %v265_v27 = vmax.f32 %v220_v23, 0.0 }
 0x122   :  { %v284_v28 = vpack.c.bf16 %v264_v25, %v262_v24 }
 0x123   :  { %v285_v29 = vpack.c.bf16 %v265_v27, %v263_v26  ;;  %v223_v30 = vpop.f32.mrb[24].mxu0 }
 0x124   :  { %v224_v31 = vadd.f32 %v223_v30, %v1042_v3  ;;  %v225_v32 = vpop.f32.mrb[25].mxu0 }
 0x125   :  { %v226_v33 = vadd.f32 %v225_v32, %v1046_v4  ;;  %v227_v34 = vpop.f32.mrb[26].mxu0  ;;  %576 = vmatprep.mubr.bf16.mxu1 %v285_v29 }
 0x126   :  { %v228_v35 = vadd.f32 %v227_v34, %v1042_v3  ;;  %v229_v36 = vpop.f32.mrb[27].mxu0  ;;  %577 = vmatmul.mubr.bf16.gmra.mrb[20].mxu1 %v284_v28  ;;  %v266_v38 = vmax.f32 %v224_v31, 0.0 }
 0x127   :  { %v230_v37 = vadd.f32 %v229_v36, %v1046_v4  ;;  %v267_v40 = vmax.f32 %v226_v33, 0.0 }
 0x128   :  { %v268_v39 = vmax.f32 %v228_v35, 0.0 }
 0x129   :  { %v269_v41 = vmax.f32 %v230_v37, 0.0 }
 0x12a   :  { %v286_v42 = vpack.c.bf16 %v268_v39, %v266_v38 }
 0x12b   :  { %v287_v43 = vpack.c.bf16 %v269_v41, %v267_v40  ;;  %v233_v44 = vpop.f32.mrb[28].mxu0 }
 0x12c   :  { %v234_v45 = vadd.f32 %v233_v44, %v1042_v3  ;;  %v235_v46 = vpop.f32.mrb[29].mxu0 }
 0x12d   :  { %v236_v47 = vadd.f32 %v235_v46, %v1046_v4  ;;  %v237_v48 = vpop.f32.mrb[30].mxu0  ;;  %586 = vmatprep.mubr.bf16.mxu1 %v287_v43 }
 0x12e   :  { %v238_v49 = vadd.f32 %v237_v48, %v1042_v3  ;;  %v239_v50 = vpop.f32.mrb[31].mxu0  ;;  %587 = vmatmul.mubr.bf16.gmra.mrb[24].mxu1 %v286_v42  ;;  %v270_v52 = vmax.f32 %v234_v45, 0.0  ;;  %v781_v3 = vcombine.high %v1083_v58, %v1083_v58 }
 0x12f   :  { %v240_v51 = vadd.f32 %v239_v50, %v1046_v4  ;;  %v271_v54 = vmax.f32 %v236_v47, 0.0  ;;  %v322_v4 = vld [vmem:[%s1148_s4] sm:$0x3]  ;;  %s900_s4 = smov [#allocation6]  }
 0x130   :  { %v272_v53 = vmax.f32 %v238_v49, 0.0  ;;  %705 = vmatprep.mubr.bf16.mxu0 %v781_v3  ;;  %v1092_v60 = vrot.slane %v322_v4, %v76_v0  ;;  %v1096_v61 = vrot.slane %v322_v4, %v80_v2  ;;  %s726_s5 = sshll.u32 %s900_s4, 4  ;;  %s727_s5 = int_to_ptr.vmem [resolvable:$true] %s726_s5 }
 0x131   :  { %v273_v55 = vmax.f32 %v240_v51, 0.0  ;;  %s870_s9 = scalar_lea.vmem %s727_s5, 128  ;;  %p875_p9 = scmp.lt.s32.totalorder %s727_s5, %s727_s5 }
 0x132   :  { %v288_v56 = vpack.c.bf16 %v272_v53, %v270_v52  ;;  %p871_p8 = scmp.ne.s32.totalorder %s727_s5, %s870_s9  ;;  %p876_p10 = scmp.lt.s32.totalorder %s870_s9, %s870_s9 }
 0x133   :  { %v289_v57 = vpack.c.bf16 %v273_v55, %v271_v54 }
 0x134   :  { %p877_p11 = por %p876_p10, %p875_p9 }
 0x135   :  { %596 = vmatprep.mubr.bf16.mxu1 %v289_v57 }
 0x136   :  { %597 = vmatmul.mubr.bf16.gmra.mrb[28].mxu1 %v288_v56  ;;  %p878_p12 = pnand %p877_p11, %p871_p8 }
 0x1d1   :  { %v528_v62 = vpop.f32.mrb[0].mxu1 }
 0x1d2   :  { %v529_v1 = vadd.f32 %v528_v62, %v1092_v60  ;;  %v530_v5 = vpop.f32.mrb[1].mxu1 }
 0x1d3   :  { %v531_v6 = vadd.f32 %v530_v5, %v1096_v61  ;;  %v532_v7 = vpop.f32.mrb[2].mxu1 }
 0x1d4   :  { %v533_v8 = vadd.f32 %v532_v7, %v1092_v60  ;;  %v534_v9 = vpop.f32.mrb[3].mxu1  ;;  %v607_v11 = vmax.f32 %v529_v1, 0.0 }
 0x1d5   :  { %v535_v10 = vadd.f32 %v534_v9, %v1096_v61  ;;  %v608_v0 = vmax.f32 %v531_v6, 0.0 }
 0x1d6   :  { %v609_v12 = vmax.f32 %v533_v8, 0.0 }
 0x1d7   :  { %v610_v13 = vmax.f32 %v535_v10, 0.0 }
 0x1d8   :  { %v640_v14 = vpack.c.bf16 %v609_v12, %v607_v11 }
 0x1d9   :  { %v641_v63 = vpack.c.bf16 %v610_v13, %v608_v0  ;;  %v538_v2 = vpop.f32.mrb[4].mxu1 }
 0x1da   :  { %v539_v15 = vadd.f32 %v538_v2, %v1092_v60  ;;  %v540_v16 = vpop.f32.mrb[5].mxu1 }
 0x1db   :  { %v541_v17 = vadd.f32 %v540_v16, %v1096_v61  ;;  %v542_v18 = vpop.f32.mrb[6].mxu1  ;;  %673 = vmatprep.subr.bf16.mxu0 %v641_v63 }
 0x1dc   :  { %v543_v19 = vadd.f32 %v542_v18, %v1092_v60  ;;  %v544_v20 = vpop.f32.mrb[7].mxu1  ;;  %674 = vmatpush1.bf16.xpose.msra.mxu0 %v640_v14  ;;  %v611_v22 = vmax.f32 %v539_v15, 0.0 }
 0x1dd   :  { %v545_v21 = vadd.f32 %v544_v20, %v1096_v61  ;;  %v612_v24 = vmax.f32 %v541_v17, 0.0 }
 0x1de   :  { %v613_v23 = vmax.f32 %v543_v19, 0.0 }
 0x1df   :  { %v614_v25 = vmax.f32 %v545_v21, 0.0 }
 0x1e0   :  { %v642_v26 = vpack.c.bf16 %v613_v23, %v611_v22 }
 0x1e1   :  { %v643_v27 = vpack.c.bf16 %v614_v25, %v612_v24  ;;  %v548_v28 = vpop.f32.mrb[8].mxu1 }
 0x1e2   :  { %v549_v29 = vadd.f32 %v548_v28, %v1092_v60  ;;  %v550_v30 = vpop.f32.mrb[9].mxu1 }
 0x1e3   :  { %v551_v31 = vadd.f32 %v550_v30, %v1096_v61  ;;  %v552_v32 = vpop.f32.mrb[10].mxu1  ;;  %675 = vmatprep.subr.bf16.mxu0 %v643_v27 }
 0x1e4   :  { %v553_v33 = vadd.f32 %v552_v32, %v1092_v60  ;;  %v554_v34 = vpop.f32.mrb[11].mxu1  ;;  %676 = vmatpush1.bf16.xpose.msra.mxu0 %v642_v26  ;;  %v615_v36 = vmax.f32 %v549_v29, 0.0 }
 0x1e5   :  { %v555_v35 = vadd.f32 %v554_v34, %v1096_v61  ;;  %v616_v38 = vmax.f32 %v551_v31, 0.0 }
 0x1e6   :  { %v617_v37 = vmax.f32 %v553_v33, 0.0 }
 0x1e7   :  { %v618_v39 = vmax.f32 %v555_v35, 0.0 }
 0x1e8   :  { %v644_v40 = vpack.c.bf16 %v617_v37, %v615_v36 }
 0x1e9   :  { %v645_v41 = vpack.c.bf16 %v618_v39, %v616_v38  ;;  %v558_v42 = vpop.f32.mrb[12].mxu1 }
 0x1ea   :  { %v559_v43 = vadd.f32 %v558_v42, %v1092_v60  ;;  %v560_v44 = vpop.f32.mrb[13].mxu1 }
 0x1eb   :  { %v561_v45 = vadd.f32 %v560_v44, %v1096_v61  ;;  %v562_v46 = vpop.f32.mrb[14].mxu1  ;;  %677 = vmatprep.subr.bf16.mxu0 %v645_v41 }
 0x1ec   :  { %v563_v47 = vadd.f32 %v562_v46, %v1092_v60  ;;  %v564_v48 = vpop.f32.mrb[15].mxu1  ;;  %678 = vmatpush1.bf16.xpose.msra.mxu0 %v644_v40  ;;  %v619_v50 = vmax.f32 %v559_v43, 0.0 }
 0x1ed   :  { %v565_v49 = vadd.f32 %v564_v48, %v1096_v61  ;;  %v620_v52 = vmax.f32 %v561_v45, 0.0 }
 0x1ee   :  { %v621_v51 = vmax.f32 %v563_v47, 0.0 }
 0x1ef   :  { %v622_v53 = vmax.f32 %v565_v49, 0.0 }
 0x1f0   :  { %v646_v54 = vpack.c.bf16 %v621_v51, %v619_v50  ;;  %v780_v51 = vcombine.low %v1083_v58, %v1083_v58 }
 0x1f1   :  { %v647_v55 = vpack.c.bf16 %v622_v53, %v620_v52  ;;  %v568_v56 = vpop.f32.mrb[16].mxu1  ;;  %v664_v52 = vpop.permute.xlu0 %663 }
 0x1f2   :  { %v569_v57 = vadd.f32 %v568_v56, %v1092_v60  ;;  %v570_v3 = vpop.f32.mrb[17].mxu1 }
 0x1f3   :  { %v571_v59 = vadd.f32 %v570_v3, %v1096_v61  ;;  %v572_v4 = vpop.f32.mrb[18].mxu1  ;;  %679 = vmatprep.subr.bf16.mxu0 %v647_v55 }
 0x1f4   :  { %v573_v62 = vadd.f32 %v572_v4, %v1092_v60  ;;  %v574_v1 = vpop.f32.mrb[19].mxu1  ;;  %680 = vmatpush1.bf16.xpose.msra.mxu0 %v646_v54  ;;  %v623_v6 = vmax.f32 %v569_v57, 0.0 }
 0x1f5   :  { %v575_v5 = vadd.f32 %v574_v1, %v1096_v61  ;;  %v624_v8 = vmax.f32 %v571_v59, 0.0 }
 0x1f6   :  { %v625_v7 = vmax.f32 %v573_v62, 0.0 }
 0x1f7   :  { %v626_v9 = vmax.f32 %v575_v5, 0.0 }
 0x1f8   :  { %v648_v10 = vpack.c.bf16 %v625_v7, %v623_v6 }
 0x1f9   :  { %v649_v11 = vpack.c.bf16 %v626_v9, %v624_v8  ;;  %v578_v12 = vpop.f32.mrb[20].mxu1 }
 0x1fa   :  { %v579_v0 = vadd.f32 %v578_v12, %v1092_v60  ;;  %v580_v13 = vpop.f32.mrb[21].mxu1 }
 0x1fb   :  { %v581_v14 = vadd.f32 %v580_v13, %v1096_v61  ;;  %v582_v63 = vpop.f32.mrb[22].mxu1  ;;  %681 = vmatprep.subr.bf16.mxu0 %v649_v11 }
 0x1fc   :  { %v583_v2 = vadd.f32 %v582_v63, %v1092_v60  ;;  %v584_v15 = vpop.f32.mrb[23].mxu1  ;;  %682 = vmatpush1.bf16.xpose.msra.mxu0 %v648_v10  ;;  %v627_v17 = vmax.f32 %v579_v0, 0.0 }
 0x1fd   :  { %v585_v16 = vadd.f32 %v584_v15, %v1096_v61  ;;  %v628_v19 = vmax.f32 %v581_v14, 0.0 }
 0x1fe   :  { %v629_v18 = vmax.f32 %v583_v2, 0.0 }
 0x1ff   :  { %v630_v20 = vmax.f32 %v585_v16, 0.0 }
 0x200   :  { %v650_v21 = vpack.c.bf16 %v629_v18, %v627_v17 }
 0x201   :  { %v651_v22 = vpack.c.bf16 %v630_v20, %v628_v19  ;;  %v588_v23 = vpop.f32.mrb[24].mxu1 }
 0x202   :  { %v589_v24 = vadd.f32 %v588_v23, %v1092_v60  ;;  %v590_v25 = vpop.f32.mrb[25].mxu1 }
 0x203   :  { %v591_v26 = vadd.f32 %v590_v25, %v1096_v61  ;;  %v592_v27 = vpop.f32.mrb[26].mxu1  ;;  %683 = vmatprep.subr.bf16.mxu0 %v651_v22 }
 0x204   :  { %v593_v28 = vadd.f32 %v592_v27, %v1092_v60  ;;  %v594_v29 = vpop.f32.mrb[27].mxu1  ;;  %684 = vmatpush1.bf16.xpose.msra.mxu0 %v650_v21  ;;  %v631_v31 = vmax.f32 %v589_v24, 0.0 }
 0x205   :  { %v595_v30 = vadd.f32 %v594_v29, %v1096_v61  ;;  %v632_v33 = vmax.f32 %v591_v26, 0.0 }
 0x206   :  { %v633_v32 = vmax.f32 %v593_v28, 0.0 }
 0x207   :  { %v634_v34 = vmax.f32 %v595_v30, 0.0 }
 0x208   :  { %v652_v35 = vpack.c.bf16 %v633_v32, %v631_v31 }
 0x209   :  { %v653_v36 = vpack.c.bf16 %v634_v34, %v632_v33  ;;  %v598_v37 = vpop.f32.mrb[28].mxu1 }
 0x20a   :  { %v599_v38 = vadd.f32 %v598_v37, %v1092_v60  ;;  %v600_v39 = vpop.f32.mrb[29].mxu1 }
 0x20b   :  { %v601_v40 = vadd.f32 %v600_v39, %v1096_v61  ;;  %v602_v41 = vpop.f32.mrb[30].mxu1  ;;  %685 = vmatprep.subr.bf16.mxu0 %v653_v36 }
 0x20c   :  { %v603_v42 = vadd.f32 %v602_v41, %v1092_v60  ;;  %v604_v43 = vpop.f32.mrb[31].mxu1  ;;  %686 = vmatpush1.bf16.xpose.msra.mxu0 %v652_v35  ;;  %v635_v45 = vmax.f32 %v599_v38, 0.0 }
 0x20d   :  { %v605_v44 = vadd.f32 %v604_v43, %v1096_v61  ;;  %v636_v47 = vmax.f32 %v601_v40, 0.0 }
 0x20e   :  { %v637_v46 = vmax.f32 %v603_v42, 0.0 }
 0x20f   :  { %v638_v48 = vmax.f32 %v605_v44, 0.0 }
 0x210   :  { %v654_v49 = vpack.c.bf16 %v637_v46, %v635_v45 }
 0x211   :  { %v655_v50 = vpack.c.bf16 %v638_v48, %v636_v47 }
 0x213   :  { %687 = vmatprep.subr.bf16.mxu0 %v655_v50 }
 0x214   :  { %688 = vmatpush1.bf16.xpose.msra.mxu0 %v654_v49 }
 0x21b   :  { %706 = vmatmul.mubr.bf16.vlgmr.msra.gmra.mrb[32].mxu0 %v780_v51 }
 0x2ee   :  { %v707_v53 = vpop.f32.mrb[32].mxu0 }
 0x2ef   :  { %v708_v54 = vadd.f32 %v707_v53, %v664_v52  ;;  %v709_v60 = vpop.f32.mrb[33].mxu0 }
 0x2f0   :  { %v710_v55 = vpop.f32.mrb[34].mxu0 }
 0x2f1   :  { %v713_v56 = vsub.f32 0.0, %v708_v54  ;;  %v711_v57 = vpop.f32.mrb[35].mxu0 }
 0x2f3   :  { %v714_v61 = vmul.f32 1.442695, %v713_v56 }
 0x2f5   :  { %844 = vpow2.f32 %v714_v61 }
 0x2ff   :  { %v845_v3 = vpop.eup %844 }
 0x300   :  { %v716_v59 = vadd.f32 1.0, %v845_v3 }
 0x302   :  { %846 = vrcp.f32 %v716_v59 }
 0x30c   :  { %v847_v4 = vpop.eup %846 }
 0x30d   :  { %719 = vst [vmem:[#allocation6] sm:$0xff] %v847_v4 }
 0x30e   :  { %881 = shalt.err (!%p878_p12)
}
 0x30f   :  { %s882_s6 = scalar_lea.hbm %s1151_s7, 128 }
 0x310   :  { %p883_p13 = scmp.ne.s32.totalorder %s1151_s7, %s882_s6  ;;  %p886_p0 = scmp.lt.u32.totalorder %s882_s6, %s1151_s7 }
 0x312   :  { %p888_p1 = pnand %p886_p0, %p883_p13 }
 0x314   :  { %891 = shalt.err (!%p888_p1)
}
 0x315   :  { %729 = dma.vmem_to_hbm [thread:$0]  %s727_s5, 128, %s1151_s7, [#allocation5]  }
 0x316   :  { %894 = dma.done.wait [#allocation5], 128  }
 0x317   :  { %895 = vsyncadd [#allocation5], 4294967168 }
 0x318   :  { %733 = vsyncpa [#allocation4], 1 }
 0x319   :  { %734 = vsyncpa [#allocation5], 1 }

</bundles_post_ra>
